<compile_context>
chip_gen: v6e
topology: v6e:2x2x1
jax: 0.10.0
libtpu: 0.0.40
codegen_flags: <defaults>
</compile_context>

<pallas_src>
import math

import jax
import jax.numpy as jnp
import numpy as np
from jax.experimental import pallas as pl
from jax.experimental.pallas import tpu as pltpu


def make_weight() -> jnp.ndarray:
    """The fixed 4x4 avg/diff mixing matrix (registered buffer in PyTorch)."""
    w = np.array(
        [[0.25, 0.25, 0.25, 0.25],
         [0.25, 0.25, -0.25, -0.25],
         [0.25, -0.25, 0.25, -0.25],
         [0.25, -0.25, -0.25, 0.25]],
        dtype=np.float32,
    )
    return jnp.asarray(w)


def _avgdiff_kernel(sq_ref, avg_ref, diff_ref):
    """2x2 (x) 2x2 Hadamard butterfly over the four parity planes.

    sq_ref:   (4, bt, T)  parity planes of the squeezed input tile (dense)
    avg_ref:  (bt, T)     output channel 0 (average), sublane/lane dense
    diff_ref: (bt, 3, T)  output channels 1..3 (differences)
    """
    x0 = sq_ref[0]                      # (bt, T) dense slabs
    x1 = sq_ref[1]
    x2 = sq_ref[2]
    x3 = sq_ref[3]
    s01 = x0 + x1
    d01 = x0 - x1
    s23 = x2 + x3
    d23 = x2 - x3
    avg_ref[...] = 0.25 * (s01 + s23)
    diff_ref[:, 0:1, :] = (0.25 * (s01 - s23))[:, None, :]
    diff_ref[:, 1:2, :] = (0.25 * (d01 + d23))[:, None, :]
    diff_ref[:, 2:3, :] = (0.25 * (d01 - d23))[:, None, :]


def _largest_divisor_leq(n: int, cap: int) -> int:
    cap = max(1, min(n, cap))
    for d in range(cap, 0, -1):
        if n % d == 0:
            return d
    return 1


def _choose_tiles(batch: int, s: int, dtype_bytes: int):
    """Pick (batch_tile, lane_tile).

    Lane tile: largest 128-multiple divisor of S capped at 4096 lanes
    (>=512 lanes already reaches ~85% of the v6e HBM roofline); otherwise
    the full extent (always a legal block shape).
    Batch tile: grown until the per-step HBM payload (4 input + 4 output
    planes) is ~8 MiB, constrained to a multiple of the sublane packing
    (8 f32 / 16 bf16) or the full batch so every block row is dense.
    """
    sub = 8 * max(1, 4 // max(1, dtype_bytes))        # 8 f32, 16 bf16, 32 int8

    tile_s = s
    if s % 128 == 0:
        for cand in range(min(s, 4096), 0, -128):
            if s % cand == 0:
                tile_s = cand
                break
    s_steps = s // tile_s

    target_elems = max(1, (8 << 20) // (8 * dtype_bytes))   # ~8 MiB/step payload
    cap = max(1, target_elems // tile_s)
    if s_steps == 1 and batch % (2 * sub) == 0:
        cap = min(cap, batch // 2)     # keep >=2 grid steps for megacore
    cap = min(cap, batch)

    bt = None
    fallback8 = None
    for d in range(cap, 0, -1):
        if batch % d:
            continue
        if d % sub == 0:
            bt = d
            break
        if fallback8 is None and d % 8 == 0:
            fallback8 = d
    if bt is None:
        bt = fallback8
    if bt is None:
        # No aligned divisor <= cap: a block dim equal to the full array
        # extent is always legal; only fall back to an arbitrary divisor if
        # the full batch would blow the VMEM budget.
        if batch * tile_s <= 8 * target_elems:
            bt = batch
        else:
            bt = _largest_divisor_leq(batch, cap)
    return bt, tile_s


def squeeze_avg_diff(x: jnp.ndarray):
    """Equivalent of SqueezeAvgDiff.forward. x: (B, C, H, W), H and W even."""
    B, C, H, W = x.shape
    assert H % 2 == 0 and W % 2 == 0, "H and W must be even"
    H2, W2 = H // 2, W // 2
    S = C * H2 * W2
    dtype_bytes = jnp.dtype(x.dtype).itemsize

    # --- glue: spatial squeeze (view + permute), identical math to PyTorch's
    # permute(0,3,5,1,2,4), but parity-major -> lane-dense (4, B, S) slab so
    # the kernel never puts a tiny extent on the sublane axis.  (See TODO.)
    sq = x.reshape(B, C, H2, 2, W2, 2)
    sq = jnp.transpose(sq, (3, 5, 0, 1, 2, 4)).reshape(4, B, S)

    bt, tile_s = _choose_tiles(B, S, dtype_bytes)
    grid_b = pl.cdiv(B, bt)
    grid_s = S // tile_s

    # Larger grid axis first -> balanced megacore split of the parallel axes.
    if grid_b >= grid_s:
        grid = (grid_b, grid_s)

        def _bi(i, j):
            return i

        def _si(i, j):
            return j
    else:
        grid = (grid_s, grid_b)

        def _bi(i, j):
            return j

        def _si(i, j):
            return i

    # Double-buffered VMEM working set: input (4 dense planes) + dense avg +
    # diff block whose 3 sublanes pad to 8.  Clamp well under v7x's 64 MiB.
    r8 = -(-bt // 8) * 8
    per_buf = (4 * r8 + r8 + 8 * bt) * tile_s * dtype_bytes
    vmem_limit = int(min(56 << 20, max(32 << 20, int(2.6 * per_buf))))

    cost = pl.CostEstimate(
        flops=12 * B * S,
        transcendentals=0,
        bytes_accessed=8 * B * S * dtype_bytes,
    )

    avg2, diff3 = pl.pallas_call(
        _avgdiff_kernel,
        out_shape=(
            jax.ShapeDtypeStruct((B, S), x.dtype),
            jax.ShapeDtypeStruct((B, 3, S), x.dtype),
        ),
        grid=grid,
        in_specs=[
            pl.BlockSpec((4, bt, tile_s), lambda i, j: (0, _bi(i, j), _si(i, j))),
        ],
        out_specs=(
            pl.BlockSpec((bt, tile_s), lambda i, j: (_bi(i, j), _si(i, j))),
            pl.BlockSpec((bt, 3, tile_s), lambda i, j: (_bi(i, j), 0, _si(i, j))),
        ),
        compiler_params=pltpu.CompilerParams(
            dimension_semantics=("parallel", "parallel"),
            vmem_limit_bytes=vmem_limit,
        ),
        cost_estimate=cost,
    )(sq)

    # avg  -> (B, C, H/2, W/2); PyTorch's .squeeze(1) drops C only when C==1.
    # diff -> (B, 3C, H/2, W/2), same channel ordering as the PyTorch .view().
    avg = avg2.reshape(B, C, H2, W2)
    if C == 1:
        avg = avg.reshape(B, H2, W2)
    diff = diff3.reshape(B, 3 * C, H2, W2)

    # Closed-form logdet: |det(weight)| == 1/16 for the fixed Haar mix, so
    # 0.25 * C*H*W * log(1/16) == -C*H*W*log(2).  Exact, no slogdet launch.
    # TODO(synk): assumes the registered 4x4 buffer is never replaced.
    logdet = jnp.asarray(-(C * H * W) * math.log(2.0), dtype=jnp.float32)

    return (avg, diff), logdet


def _reference(x, weight):
    """Pure-JAX reference mirroring the PyTorch forward math."""
    B, C, H, W = x.shape
    H2, W2 = H // 2, W // 2
    sq = x.reshape(B, C, H2, 2, W2, 2)
    sq = jnp.transpose(sq, (0, 3, 5, 1, 2, 4)).reshape(B, 4, C, H2, W2)
    out = jnp.einsum("oi,bichw->bochw", weight, sq,
                     precision=jax.lax.Precision.HIGHEST)
    avg = out[:, 0]
    if C == 1:
        avg = avg[:, 0]
    diff = out[:, 1:].reshape(B, 3 * C, H2, W2)
    _, logabsdet = jnp.linalg.slogdet(weight)
    logdet = (0.25 * C * H * W) * logabsdet.astype(jnp.float32)
    return (avg, diff), logdet


if __name__ == "__main__":
    weight = make_weight()
    key = jax.random.PRNGKey(0)

    # Primary small case, a multi-tile case (grid_s > 1), and a C==1 case
    # (exercises the .squeeze(1) semantics and a non-128-multiple lane dim).
    cases = [(2, 4, 16, 16), (2, 8, 64, 64), (2, 1, 16, 16)]
    for case_idx, (B, C, H, W) in enumerate(cases):
        case_key = jax.random.fold_in(key, case_idx)
        x = jax.random.normal(case_key, (B, C, H, W), dtype=jnp.float32)

        (avg, diff), logdet = squeeze_avg_diff(x)
        jax.block_until_ready((avg, diff, logdet))

        (avg_ref, diff_ref), logdet_ref = _reference(x, weight)
        np.testing.assert_allclose(np.asarray(avg), np.asarray(avg_ref),
                                   rtol=1e-5, atol=1e-5)
        np.testing.assert_allclose(np.asarray(diff), np.asarray(diff_ref),
                                   rtol=1e-5, atol=1e-5)
        np.testing.assert_allclose(np.asarray(logdet), np.asarray(logdet_ref),
                                   rtol=1e-5, atol=1e-4)
        if C == 1:
            assert avg.shape == (B, H // 2, W // 2)
        else:
            assert avg.shape == (B, C, H // 2, W // 2)
        assert diff.shape == (B, 3 * C, H // 2, W // 2)

    print("KERNEL_OK")
</pallas_src>

<mosaic_0001>
module attributes {stable_mosaic.version = 11 : i64} {
  func.func @_avgdiff_kernel(%arg0: i32, %arg1: i32, %arg2: memref<4x2x256xf32, #tpu.memory_space<vmem>>, %arg3: memref<2x256xf32, #tpu.memory_space<vmem>>, %arg4: memref<2x3x256xf32, #tpu.memory_space<vmem>>) attributes {dimension_semantics = [#tpu.dimension_semantics<parallel>, #tpu.dimension_semantics<parallel>], iteration_bounds = array<i64: 1, 1>, scalar_prefetch = 0 : i64, scratch_operands = 0 : i64, tpu.core_type = #tpu.core_type<tc>, window_params = [{transform_indices = @transform_0, window_bounds = array<i64: 4, 2, 256>}, {transform_indices = @transform_1, window_bounds = array<i64: 2, 256>}, {transform_indices = @transform_2, window_bounds = array<i64: 2, 3, 256>}]} {
    %c0 = arith.constant 0 : index
    %c0_0 = arith.constant 0 : index
    %c0_1 = arith.constant 0 : index
    %0 = vector.load %arg2[%c0, %c0_0, %c0_1] : memref<4x2x256xf32, #tpu.memory_space<vmem>>, vector<1x2x256xf32>
    %1 = vector.shape_cast %0 : vector<1x2x256xf32> to vector<2x256xf32>
    %c1 = arith.constant 1 : index
    %c0_2 = arith.constant 0 : index
    %c0_3 = arith.constant 0 : index
    %2 = vector.load %arg2[%c1, %c0_2, %c0_3] : memref<4x2x256xf32, #tpu.memory_space<vmem>>, vector<1x2x256xf32>
    %3 = vector.shape_cast %2 : vector<1x2x256xf32> to vector<2x256xf32>
    %c2 = arith.constant 2 : index
    %c0_4 = arith.constant 0 : index
    %c0_5 = arith.constant 0 : index
    %4 = vector.load %arg2[%c2, %c0_4, %c0_5] : memref<4x2x256xf32, #tpu.memory_space<vmem>>, vector<1x2x256xf32>
    %5 = vector.shape_cast %4 : vector<1x2x256xf32> to vector<2x256xf32>
    %c3 = arith.constant 3 : index
    %c0_6 = arith.constant 0 : index
    %c0_7 = arith.constant 0 : index
    %6 = vector.load %arg2[%c3, %c0_6, %c0_7] : memref<4x2x256xf32, #tpu.memory_space<vmem>>, vector<1x2x256xf32>
    %7 = vector.shape_cast %6 : vector<1x2x256xf32> to vector<2x256xf32>
    %8 = arith.addf %1, %3 : vector<2x256xf32>
    %9 = arith.subf %1, %3 : vector<2x256xf32>
    %10 = arith.addf %5, %7 : vector<2x256xf32>
    %11 = arith.subf %5, %7 : vector<2x256xf32>
    %12 = arith.addf %8, %10 : vector<2x256xf32>
    %cst = arith.constant 2.500000e-01 : f32
    %13 = vector.broadcast %cst : f32 to vector<2x256xf32>
    %14 = arith.mulf %13, %12 : vector<2x256xf32>
    %c0_8 = arith.constant 0 : index
    %c0_9 = arith.constant 0 : index
    %15 = vector.load %arg3[%c0_8, %c0_9] : memref<2x256xf32, #tpu.memory_space<vmem>>, vector<2x256xf32>
    tpu.vector_store %arg3[%c0_8, %c0_9], %14 {strides = array<i32>} : memref<2x256xf32, #tpu.memory_space<vmem>>, vector<2x256xf32>,
    %16 = arith.subf %8, %10 : vector<2x256xf32>
    %cst_10 = arith.constant 2.500000e-01 : f32
    %17 = vector.broadcast %cst_10 : f32 to vector<2x256xf32>
    %18 = arith.mulf %17, %16 : vector<2x256xf32>
    %19 = vector.shape_cast %18 : vector<2x256xf32> to vector<2x1x256xf32>
    %c0_11 = arith.constant 0 : index
    %c0_12 = arith.constant 0 : index
    %c0_13 = arith.constant 0 : index
    %20 = vector.load %arg4[%c0_11, %c0_12, %c0_13] : memref<2x3x256xf32, #tpu.memory_space<vmem>>, vector<2x1x256xf32>
    tpu.vector_store %arg4[%c0_11, %c0_12, %c0_13], %19 {strides = array<i32>} : memref<2x3x256xf32, #tpu.memory_space<vmem>>, vector<2x1x256xf32>,
    %21 = arith.addf %9, %11 : vector<2x256xf32>
    %cst_14 = arith.constant 2.500000e-01 : f32
    %22 = vector.broadcast %cst_14 : f32 to vector<2x256xf32>
    %23 = arith.mulf %22, %21 : vector<2x256xf32>
    %24 = vector.shape_cast %23 : vector<2x256xf32> to vector<2x1x256xf32>
    %c0_15 = arith.constant 0 : index
    %c1_16 = arith.constant 1 : index
    %c0_17 = arith.constant 0 : index
    %25 = vector.load %arg4[%c0_15, %c1_16, %c0_17] : memref<2x3x256xf32, #tpu.memory_space<vmem>>, vector<2x1x256xf32>
    tpu.vector_store %arg4[%c0_15, %c1_16, %c0_17], %24 {strides = array<i32>} : memref<2x3x256xf32, #tpu.memory_space<vmem>>, vector<2x1x256xf32>,
    %26 = arith.subf %9, %11 : vector<2x256xf32>
    %cst_18 = arith.constant 2.500000e-01 : f32
    %27 = vector.broadcast %cst_18 : f32 to vector<2x256xf32>
    %28 = arith.mulf %27, %26 : vector<2x256xf32>
    %29 = vector.shape_cast %28 : vector<2x256xf32> to vector<2x1x256xf32>
    %c0_19 = arith.constant 0 : index
    %c2_20 = arith.constant 2 : index
    %c0_21 = arith.constant 0 : index
    %30 = vector.load %arg4[%c0_19, %c2_20, %c0_21] : memref<2x3x256xf32, #tpu.memory_space<vmem>>, vector<2x1x256xf32>
    tpu.vector_store %arg4[%c0_19, %c2_20, %c0_21], %29 {strides = array<i32>} : memref<2x3x256xf32, #tpu.memory_space<vmem>>, vector<2x1x256xf32>,
    return
  }
  func.func @transform_0(%arg0: i32, %arg1: i32) -> (i32, i32, i32) {
    %c0_i32 = arith.constant 0 : i32
    %c0_i32_0 = arith.constant 0 : i32
    return %c0_i32, %arg0, %arg1 : i32, i32, i32
  }
  func.func @transform_1(%arg0: i32, %arg1: i32) -> (i32, i32) {
    %c0_i32 = arith.constant 0 : i32
    return %arg0, %arg1 : i32, i32
  }
  func.func @transform_2(%arg0: i32, %arg1: i32) -> (i32, i32, i32) {
    %c0_i32 = arith.constant 0 : i32
    %c0_i32_0 = arith.constant 0 : i32
    return %arg0, %c0_i32, %arg1 : i32, i32, i32
  }
}

</mosaic_0001>

<bundles_post_ra>
// kernel: tpu_custom_call.1
= control target key start
LH: loop header
LB: loop body
LE: loop exit
PB: predicated region body
PF: predicated region fallthrough
CT: control target
= control target key end

     0   :  { %8 = vsyncpa [#allocation3], 0  ;;  %s226_s0 = inlined_call_operand.hbm [shape: f32[4,2,256], index: 0, kind: input, shape index: {}]   ;;  %s227_s1 = inlined_call_operand.hbm [shape: f32[2,256], index: 1, kind: output, shape index: {0}]   ;;  %s228_s2 = inlined_call_operand.vmem [shape: f32[2,3,256], index: 2, kind: output, shape index: {1}]  }
   0x1   :  { %9 = vsyncpa [#allocation4], 0  ;;  %s166_s9 = smov [#allocation2]  }
   0x2   :  { %s15_s10 = sshll.u32 %s166_s9, 4  ;;  %s16_s10 = int_to_ptr.vmem [resolvable:$true] %s15_s10 }
   0x3   :  { %s130_s11 = scalar_lea.vmem %s16_s10, 256  ;;  %p135_p1 = scmp.lt.s32.totalorder %s16_s10, %s16_s10 }
   0x4   :  { %p131_p0 = scmp.ne.s32.totalorder %s16_s10, %s130_s11  ;;  %p136_p2 = scmp.lt.s32.totalorder %s130_s11, %s130_s11 }
   0x6   :  { %p137_p3 = por %p136_p2, %p135_p1 }
   0x8   :  { %p138_p4 = pnand %p137_p3, %p131_p0 }
   0xa   :  { %141 = shalt.err (!%p138_p4)
}
   0xb   :  { %s167_s12 = smov 64   ;;  %s168_s13 = smov 4  }
   0xc   :  { %21 = dma.hbm_to_vmem [thread:$0]  %s226_s0, 256, %s16_s10, [#allocation3], %s167_s12, %s167_s12, %s168_s13  }
   0xd   :  { %162 = dma.done.wait [#allocation3], 256  }
   0xe   :  { %163 = vsyncadd [#allocation3], 4294967040  ;;  %v169_v0 = vmov 1966171168   ;;  %v45_v2 = vlaneseq  ;;  %v25_v5 = vld [vmem:[#allocation2] sm:$0xf] }
   0xf   :  { %v43_v1 = vunpack.c.l.s4 %v169_v0  ;;  %v27_v6 = vld [vmem:[#allocation2 + $0x4] sm:$0xf]  ;;  %v29_v7 = vld [vmem:[#allocation2 + $0x8] sm:$0xf]  ;;  %v31_v8 = vld [vmem:[#allocation2 + $0xc] sm:$0xf] }
  0x10   :  { %v46_v4 = vshrl.u32 %v45_v2, 7  ;;  %v32_v9 = vadd.f32 %v27_v6, %v25_v5  ;;  %v33_v10 = vsub.f32 %v25_v5, %v27_v6  ;;  %v34_v11 = vadd.f32 %v31_v8, %v29_v7  ;;  %s170_s16 = smov [#allocation5]  }
  0x11   :  { %v44_v3 = vunpack.c.0.s8 %v43_v1  ;;  %v35_v12 = vsub.f32 %v29_v7, %v31_v8  ;;  %s99_s17 = sshll.u32 %s170_s16, 4  ;;  %vm189_vm0 = vcmp.lt.s32.totalorder %v45_v2, 256  ;;  %s100_s17 = int_to_ptr.vmem [resolvable:$true] %s99_s17 }
  0x12   :  { %v36_v14 = vadd.f32 %v34_v11, %v32_v9  ;;  %v39_v15 = vsub.f32 %v32_v9, %v34_v11  ;;  %s142_s0 = scalar_lea.vmem %s100_s17, 64  ;;  %p147_p6 = scmp.lt.s32.totalorder %s100_s17, %s100_s17 }
  0x13   :  { %v47_v13 = vsub.s32 %v44_v3, %v46_v4  ;;  %v59_v16 = vadd.f32 %v35_v12, %v33_v10  ;;  %v76_v17 = vsub.f32 %v33_v10, %v35_v12  ;;  %p143_p5 = scmp.ne.s32.totalorder %s100_s17, %s142_s0  ;;  %p148_p7 = scmp.lt.s32.totalorder %s142_s0, %s142_s0 }
  0x14   :  { %v37_v18 = vmul.f32 0.25, %v36_v14  ;;  %v40_v19 = vmul.f32 0.25, %v39_v15 }
  0x15   :  { %v60_v20 = vmul.f32 0.25, %v59_v16  ;;  %v77_v21 = vmul.f32 0.25, %v76_v17  ;;  %p149_p8 = por %p148_p7, %p147_p6 }
  0x16   :  { %38 = vst [vmem:[#allocation5] sm:$0xf] %v37_v18  ;;  %v48_v23 = vrot.slane %v40_v19, %v47_v13 }
  0x17   :  { %v68_v24 = vrot.slane %v60_v20, %v47_v13  ;;  %v85_v25 = vrot.slane %v77_v21, %v47_v13  ;;  %p150_p9 = pnand %p149_p8, %p143_p5 }
  0x19   :  { %153 = shalt.err (!%p150_p9)
}
  0x1a   :  { %102 = dma.vmem_to_hbm [thread:$0]  %s100_s17, 64, %s227_s1, [#allocation4]   ;;  %56 = vst.msk [vmem:[%s228_s2] ss:$4 sm:$0x3] %vm189_vm0, %v48_v23  ;;  %v49_v26 = vcombine.high %v48_v23, %v48_v23  ;;  %v69_v27 = vcombine.high %v68_v24, %v68_v24  ;;  %v86_v28 = vcombine.high %v85_v25, %v85_v25 }
  0x1b   :  { %113 = vst.msk [vmem:[%s228_s2 + $0x1] ss:$4 sm:$0x3] %vm189_vm0, %v68_v24  ;;  %115 = vst.msk [vmem:[%s228_s2 + $0x2] ss:$4 sm:$0x3] %vm189_vm0, %v85_v25 }
  0x1c   :  { %112 = vst.msk [vmem:[%s228_s2 + $0x8] ss:$4 sm:$0x3] %vm189_vm0, %v49_v26  ;;  %114 = vst.msk [vmem:[%s228_s2 + $0x9] ss:$4 sm:$0x3] %vm189_vm0, %v69_v27 }
  0x1d   :  { %116 = vst.msk [vmem:[%s228_s2 + $0xa] ss:$4 sm:$0x3] %vm189_vm0, %v86_v28 }
  0x1e   :  { %164 = dma.done.wait [#allocation4], 64  }
  0x1f   :  { %165 = vsyncadd [#allocation4], 4294967232 }
  0x20   :  { %110 = vsyncpa [#allocation3], 1 }
  0x21   :  { %111 = vsyncpa [#allocation4], 1 }

</bundles_post_ra>
